<compile_context>
chip_gen: v5e
topology: v5e:2x2
jax: 0.10.0
libtpu: 0.0.40
codegen_flags: <defaults>
</compile_context>

<pallas_src>
import math

import jax
import jax.numpy as jnp
from jax.experimental import pallas as pl
from jax.experimental.pallas import tpu as pltpu


def _round_up(n: int, m: int) -> int:
    return ((n + m - 1) // m) * m


def _build_pe(d_model: int, max_len: int) -> jnp.ndarray:
    """Deterministic sinusoidal positional-encoding table, shape [max_len, d_model]."""
    assert d_model % 2 == 0, "sinusoidal PE as written requires even d_model"
    position = jnp.arange(0, max_len, dtype=jnp.float32)[:, None]            # [L, 1]
    div_term = jnp.exp(
        jnp.arange(0, d_model, 2, dtype=jnp.float32) * -(math.log(10000.0) / d_model)
    )                                                                          # [D/2]
    angles = position * div_term                                               # [L, D/2]
    pe = jnp.zeros((max_len, d_model), dtype=jnp.float32)
    pe = pe.at[:, 0::2].set(jnp.sin(angles))
    pe = pe.at[:, 1::2].set(jnp.cos(angles))
    return pe


def _pos_enc_kernel(x_ref, pe_ref, o_ref):
    # Squeezed batch dim: x_ref / o_ref / pe_ref are all (TS, Dp) tiles.
    o_ref[...] = x_ref[...] + pe_ref[...]
    # TODO(synk): training-mode dropout would use pltpu.prng_seed +
    # pltpu.prng_random_bits here; the reference module is built with dropout=0.


def positional_encoding(
    x: jnp.ndarray,
    pe_table: jnp.ndarray,
    *,
    force_pallas: bool = False,
    target_tile_bytes: int = 2 * 1024 * 1024,
) -> jnp.ndarray:
    """x: [B, S, D]; pe_table: [max_len, D]. Returns x + pe[:S] (dropout p=0)."""
    B, S, D = x.shape
    max_len, d_pe = pe_table.shape
    assert d_pe == D, f"pe_table d_model {d_pe} != x d_model {D}"
    assert S <= max_len, f"sequence length {S} exceeds pe max_len {max_len}"

    pe_slice = pe_table[:S, :].astype(x.dtype)

    # Tiny inputs: kernel-launch + per-step overhead exceeds the memory traffic;
    # let XLA fuse the add into the surrounding graph instead.
    if not force_pallas and x.size * x.dtype.itemsize < (1 << 20):
        return x + pe_slice[None, :, :]

    itemsize = x.dtype.itemsize

    # Lane dim must be a multiple of 128 for unmasked full-width stores.
    Dp = _round_up(D, 128)

    # Sequence tile: biggest multiple of 8 rows such that one tile is <= the
    # per-buffer budget (keeps 3 arrays x 2 buffers comfortably inside scoped
    # VMEM on all of v5e / v6e / v7x).
    max_rows = max(8, (target_tile_bytes // (Dp * itemsize)) // 8 * 8)
    TS = min(_round_up(S, 8), max_rows)
    S_pad = _round_up(S, TS)

    needs_pad = (S_pad, Dp) != (S, D)
    if needs_pad:
        xp = jnp.pad(x, ((0, 0), (0, S_pad - S), (0, Dp - D)))
        pep = jnp.pad(pe_slice, ((0, S_pad - S), (0, Dp - D)))
    else:
        xp = x
        pep = pe_slice

    # Double-buffered working set: 3 arrays (x, pe, out) x 2 buffers x tile.
    tile_bytes = TS * Dp * itemsize
    working_set = 3 * 2 * tile_bytes
    vmem_limit = int(min(max(2 * working_set, 16 * 1024 * 1024), 32 * 1024 * 1024))

    out = pl.pallas_call(
        _pos_enc_kernel,
        out_shape=jax.ShapeDtypeStruct((B, S_pad, Dp), x.dtype),
        grid_spec=pltpu.PrefetchScalarGridSpec(
            num_scalar_prefetch=0,
            grid=(B, S_pad // TS),
            in_specs=[
                pl.BlockSpec((None, TS, Dp), lambda b, s: (b, s, 0)),
                pl.BlockSpec((TS, Dp), lambda b, s: (s, 0)),
            ],
            out_specs=pl.BlockSpec((None, TS, Dp), lambda b, s: (b, s, 0)),
        ),
        input_output_aliases={0: 0},  # in-place add on x's HBM buffer
        compiler_params=pltpu.CompilerParams(
            dimension_semantics=("parallel", "parallel"),
            vmem_limit_bytes=vmem_limit,
        ),
    )(xp, pep)

    if needs_pad:
        out = out[:, :S, :D]
    return out


if __name__ == "__main__":
    MAX_LEN = 60

    # Primary check: transformer d_model=512 (lane-dense), small batch/seq.
    B, S, D = 2, 8, 512
    key = jax.random.PRNGKey(0)
    x = jax.random.normal(key, (B, S, D), dtype=jnp.float32)
    pe_table = _build_pe(D, MAX_LEN)

    ref = x + pe_table[:S, :][None, :, :]          # dropout p=0 -> identity
    out = positional_encoding(x, pe_table, force_pallas=True)
    out = jax.block_until_ready(out)
    assert out.shape == (B, S, D)
    assert jnp.allclose(out, ref, atol=1e-6), "mismatch vs reference (D=512)"

    # Secondary check: the script's `PositionalEncoding(20, dropout=0)` — a
    # d_model that is not a multiple of 128, exercising the padding path.
    D2 = 20
    x2 = jax.random.normal(jax.random.PRNGKey(0), (B, S, D2), dtype=jnp.float32)
    pe_table2 = _build_pe(D2, MAX_LEN)
    ref2 = x2 + pe_table2[:S, :][None, :, :]
    out2 = jax.block_until_ready(positional_encoding(x2, pe_table2, force_pallas=True))
    assert out2.shape == (B, S, D2)
    assert jnp.allclose(out2, ref2, atol=1e-6), "mismatch vs reference (D=20)"

    print("KERNEL_OK")
</pallas_src>

<mosaic_0001>
module attributes {stable_mosaic.version = 11 : i64} {
  func.func @_pos_enc_kernel(%arg0: i32, %arg1: i32, %arg2: memref<1x8x512xf32, #tpu.memory_space<vmem>>, %arg3: memref<8x512xf32, #tpu.memory_space<vmem>>, %arg4: memref<1x8x512xf32, #tpu.memory_space<vmem>>) attributes {dimension_semantics = [#tpu.dimension_semantics<parallel>, #tpu.dimension_semantics<parallel>], iteration_bounds = array<i64: 2, 1>, scalar_prefetch = 0 : i64, scratch_operands = 0 : i64, tpu.core_type = #tpu.core_type<tc>, window_params = [{transform_indices = @transform_0, window_bounds = array<i64: 1, 8, 512>}, {transform_indices = @transform_1, window_bounds = array<i64: 8, 512>}, {transform_indices = @transform_2, window_bounds = array<i64: 1, 8, 512>}]} {
    %c0 = arith.constant 0 : index
    %c0_0 = arith.constant 0 : index
    %c0_1 = arith.constant 0 : index
    %0 = vector.load %arg2[%c0, %c0_0, %c0_1] : memref<1x8x512xf32, #tpu.memory_space<vmem>>, vector<1x8x512xf32>
    %1 = vector.shape_cast %0 : vector<1x8x512xf32> to vector<8x512xf32>
    %c0_2 = arith.constant 0 : index
    %c0_3 = arith.constant 0 : index
    %2 = vector.load %arg3[%c0_2, %c0_3] : memref<8x512xf32, #tpu.memory_space<vmem>>, vector<8x512xf32>
    %3 = arith.addf %1, %2 : vector<8x512xf32>
    %c0_4 = arith.constant 0 : index
    %c0_5 = arith.constant 0 : index
    %c0_6 = arith.constant 0 : index
    %4 = vector.load %arg4[%c0_4, %c0_5, %c0_6] : memref<1x8x512xf32, #tpu.memory_space<vmem>>, vector<1x8x512xf32>
    %5 = vector.shape_cast %4 : vector<1x8x512xf32> to vector<8x512xf32>
    %6 = vector.shape_cast %3 : vector<8x512xf32> to vector<1x8x512xf32>
    tpu.vector_store %arg4[%c0_4, %c0_5, %c0_6], %6 {strides = array<i32>} : memref<1x8x512xf32, #tpu.memory_space<vmem>>, vector<1x8x512xf32>,
    return
  }
  func.func @transform_0(%arg0: i32, %arg1: i32) -> (i32, i32, i32) {
    %c0_i32 = arith.constant 0 : i32
    %c0_i32_0 = arith.constant 0 : i32
    return %arg0, %arg1, %c0_i32 : i32, i32, i32
  }
  func.func @transform_1(%arg0: i32, %arg1: i32) -> (i32, i32) {
    %c0_i32 = arith.constant 0 : i32
    %c0_i32_0 = arith.constant 0 : i32
    return %arg1, %c0_i32 : i32, i32
  }
  func.func @transform_2(%arg0: i32, %arg1: i32) -> (i32, i32, i32) {
    %c0_i32 = arith.constant 0 : i32
    %c0_i32_0 = arith.constant 0 : i32
    return %arg0, %arg1, %c0_i32 : i32, i32, i32
  }
}

</mosaic_0001>

<bundles_post_ra>
// kernel: tpu_custom_call.1
= control target key start
LH: loop header
LB: loop body
LE: loop exit
PB: predicated region body
PF: predicated region fallthrough
CT: control target
= control target key end

     0   :  { %7 = vsyncpa [#allocation3], 0  ;;  %s675_s0 = inlined_call_operand.hbm [shape: f32[2,8,512], index: 0, kind: input, shape index: {}, may-alias: {0,2}]   ;;  %s676_s1 = inlined_call_operand.vmem [shape: f32[8,512], index: 1, kind: input, shape index: {}]   ;;  %s677_s2 = inlined_call_operand.hbm [shape: f32[2,8,512], index: 2, kind: output, shape index: {}, may-alias: {0,2}]  }
   0x1   :  { %9 = vsyncpa [#allocation3 + $0x1], 0 }
   0x2   :  { %10 = vsyncpa [#allocation4], 0 }
   0x3   :  { %12 = vsyncpa [#allocation4 + $0x1], 0  ;;  %s543_s9 = smov 0   ;;  %s545_s10 = smov 0  }
   0x4   :  { %s547_s11 = smov 0   ;;  %s549_s12 = smov 0  }
   0x5   :  { %s551_s13 = smov 0   ;;  %s553_s14 = smov 0  }
   0x6 LB: > { %s334_s15 = sadd.s32 4294967295, %s526_s14   ;;  %s335_s16 = sadd.s32 4294967294, %s526_s14   ;;  %s526_s14 = sphi %s553_s14, %s18_s14   ;;  %s522_s13 = sphi %s551_s13, %s686_s13   ;;  %s518_s12 = sphi %s549_s12, %s685_s12   ;;  %s514_s11 = sphi %s547_s11, %s684_s11   ;;  %s510_s10 = sphi %s545_s10, %s683_s10   ;;  %s506_s9 = sphi %s543_s9, %s682_s9  }
   0x7   : > { %s30_s17 = sadd.s32 1, %s522_s13  ;;  %s39_s18 = sadd.s32 1, %s514_s11 }
   0x8   : > { %p32_p0 = scmp.ge.s32.totalorder %s30_s17, 2  ;;  %p46_p1 = scmp.ne.s32.totalorder %s514_s11, %s510_s10 }
   0x9   : > { %p47_p2 = scmp.eq.s32.totalorder %s526_s14, 0  ;;  %p52_p3 = scmp.ne.s32.totalorder %s510_s10, %s506_s9 }
   0xa   : > { %s688_s17 = smov (%p32_p0, %s30_s17), 0  ;;  %p53_p5 = scmp.eq.s32.totalorder %s334_s15, 0 }
   0xb   : > { %p584_p4 = por %p47_p2, %p46_p1  ;;  %s34_s20 = ssub.s32 %s522_s13, %s688_s17 }
   0xc   : > { %p104_p6 = scmp.eq.s32.totalorder %s334_s15, 1  ;;  %p37_p7 = scmp.eq.s32.totalorder %s34_s20, 0 }
   0xd   : > { %p590_p8 = por %p53_p5, %p52_p3  ;;  %p110_p10 = scmp.eq.s32.totalorder %s335_s16, 1 }
   0xe   : > { %p594_p9 = por %p104_p6, %p46_p1  ;;  %p338_p12 = scmp.ge.s32.totalorder %s526_s14, 2 }
   0xf   : > { %s599_s23 = scalar_select %p37_p7, %s514_s11, %s39_s18  }
  0x10   : > { %p601_p11 = por %p110_p10, %p52_p3  ;;  %p364_p13 = scmp.lt.s32.totalorder %s526_s14, 2 }
  0x11   : > { %s138_s25 = sand.u32 1, %s514_s11   ;;  %s350_s27 = sshll.u32 %s522_s13, 5 }
  0x12   : > { %s339_s26 = sshll.u32 %s138_s25, 5  ;;  %s149_s30 = scalar_lea.hbm %s675_s0, %s350_s27 }
  0x13   : > { %s142_s3 = scalar_lea.vmem [#allocation2], %s339_s26  ;;  %s151_s5 = sshll.u32 %s149_s30, 4  ;;  %s152_s5 = int_to_ptr.hbm [resolvable:$true] %s151_s5 }
  0x14   : > { %s153_s4 = sshll.u32 %s142_s3, 4  ;;  %p357_p0 = pnand %p364_p13, %p584_p4  ;;  %s154_s4 = int_to_ptr.vmem [resolvable:$true] %s153_s4 }
  0x15   : > { %p342_p1 = scmp.ge.s32.totalorder %s526_s14, 1  ;;  %p158_p2 = scmp.lt.s32.totalorder %s526_s14, 3 }
  0x16   : > { %s139_s6 = scalar_lea.sflag [#allocation3], %s138_s25 }
  0x17   : > { %359 = dma.hbm_to_vmem [thread:$0]  (!%p357_p0), %s152_s5, 512, %s154_s4, %s139_s6  }
  0x18   : > { %p159_p3 = pnand %p342_p1, %p158_p2 }
  0x19   : > { %s617_s7 = sand.u32 (!%p159_p3), 1, %s510_s10  }
  0x1a   : > { %162 = sbr.rel (%p159_p3) target bundleno = 47 (0x2f), region = 28  ;;  %s343_s8 = sshll.u32 (!%p159_p3), %s617_s7, 5 }
  0x1b   : > { %s165_s15 = scalar_lea.sflag (!%p159_p3), [#allocation3], %s617_s7  ;;  %s168_s16 = scalar_lea.vmem (!%p159_p3), [#allocation2], %s343_s8 }
  0x1f   : > { %497 = dma.done.wait (%p590_p8), %s165_s15, 512  }
  0x20   : > { %499 = vsyncadd (%p590_p8), %s165_s15, 4294966784  ;;  %s351_s18 = sshll.u32 %s518_s12, 5  ;;  %v200_v0 = vld [vmem:[%s168_s16] sm:$0xff]  ;;  %v201_v2 = vld [vmem:[%s168_s16 + $0x8] sm:$0xff]  ;;  %s194_s28 = scalar_lea.vmem [#allocation5], %s343_s8 }
  0x21   : > { %s230_s25 = scalar_lea.hbm %s677_s2, %s351_s18  ;;  %v204_v1 = vld [vmem:[%s676_s1] sm:$0xff]  ;;  %s232_s29 = sshll.u32 %s194_s28, 4  ;;  %v205_v4 = vld [vmem:[%s676_s1 + $0x8] sm:$0xff]  ;;  %v202_v5 = vld [vmem:[%s168_s16 + $0x10] sm:$0xff]  ;;  %s233_s29 = int_to_ptr.vmem [resolvable:$true] %s232_s29 }
  0x22   : > { %v208_v3 = vadd.f32 %v204_v1, %v200_v0  ;;  %v206_v6 = vld [vmem:[%s676_s1 + $0x10] sm:$0xff]  ;;  %s234_s4 = sshll.u32 %s230_s25, 4  ;;  %v209_v7 = vadd.f32 %v205_v4, %v201_v2  ;;  %v203_v9 = vld [vmem:[%s168_s16 + $0x18] sm:$0xff]  ;;  %s217_s8 = scalar_lea.sflag [#allocation4], %s617_s7  ;;  %s235_s4 = int_to_ptr.hbm [resolvable:$true] %s234_s4 }
  0x23   : > { %v210_v8 = vadd.f32 %v206_v6, %v202_v5  ;;  %v207_v10 = vld [vmem:[%s676_s1 + $0x18] sm:$0xff]  ;;  %s458_s15 = sshra.s32 %s235_s4, 4  ;;  %s464_s20 = scalar_lea.hbm %s677_s2, 64  ;;  %s459_s15 = int_to_ptr.hbm [resolvable:$true] %s458_s15 }
  0x24   : > { %212 = vst [vmem:[%s194_s28] sm:$0xff] %v208_v3  ;;  %v211_v11 = vadd.f32 %v207_v10, %v203_v9  ;;  %s460_s18 = scalar_lea.hbm %s459_s15, 32  ;;  %p465_p7 = scmp.lt.s32.totalorder %s459_s15, %s677_s2 }
  0x25   : > { %213 = vst [vmem:[%s194_s28 + $0x8] sm:$0xff] %v209_v7  ;;  %p461_p4 = scmp.ne.s32.totalorder %s459_s15, %s460_s18  ;;  %p466_p8 = scmp.lt.s32.totalorder %s464_s20, %s460_s18 }
  0x26   : > { %214 = vst [vmem:[%s194_s28 + $0x10] sm:$0xff] %v210_v8 }
  0x27   : > { %215 = vst [vmem:[%s194_s28 + $0x18] sm:$0xff] %v211_v11  ;;  %p462_p5 = pnand %p461_p4, %p594_p9  ;;  %p467_p10 = por %p466_p8, %p465_p7 }
  0x29   : > { %p463_p6 = pneg %p462_p5 }
  0x2b   : > { %p468_p13 = pnand %p467_p10, %p463_p6 }
  0x2d   : > { %471 = shalt.err (!%p468_p13)
}
  0x2e   : > { %354 = dma.vmem_to_hbm [thread:$0]  (%p594_p9), %s233_s29, 512, %s235_s4, %s217_s8  }
  0x2f PF: > { %s246_s7 = sand.u32 1, %s506_s9   ;;  %p361_p0 = pnand %p338_p12, %p601_p11 }
  0x30   : > { %s247_s27 = scalar_lea.sflag [#allocation4], %s246_s7 }
  0x31   : > { %p362_p1 = pneg %p361_p0 }
  0x33   : > { %501 = dma.done.wait (%p362_p1), %s247_s27, 512  }
  0x34   : > { %503 = vsyncadd (%p362_p1), %s247_s27, 4294966784  ;;  %s18_s14 = sadd.s32 1, %s526_s14   ;;  %s682_s9 = smov %s510_s10 }
  0x35   : > { %p15_p2 = scmp.ge.s32.totalorder %s18_s14, 4   ;;  %s683_s10 = smov %s514_s11 }
  0x36   : > { %s684_s11 = smov %s599_s23  ;;  %s685_s12 = smov %s522_s13 }
  0x37   : > { %s686_s13 = smov %s688_s17  ;;  %17 = sbr.rel (!%p15_p2) target bundleno = 6 (0x6), region = 76 }
  0x3c   :  { %253 = vsyncpa [#allocation3], 1 }
  0x3d   :  { %255 = vsyncpa [#allocation3 + $0x1], 1 }
  0x3e   :  { %256 = vsyncpa [#allocation4], 1 }
  0x3f   :  { %258 = vsyncpa [#allocation4 + $0x1], 1 }

</bundles_post_ra>
